<compile_context>
chip_gen: v6e
topology: v6e:2x2x1
jax: 0.10.0
libtpu: 0.0.40
codegen_flags: <defaults>
</compile_context>

<pallas_src>
import functools
import math

import numpy as np
import jax
import jax.numpy as jnp
from jax import lax
from jax.experimental import pallas as pl
from jax.experimental.pallas import tpu as pltpu


# --------------------------------------------------------------------------- #
# small math helpers (usable both inside kernels and in the pure-JAX reference)
# --------------------------------------------------------------------------- #
def _gelu_tanh(x):
    c = 0.7978845608028654  # sqrt(2/pi)
    return 0.5 * x * (1.0 + jnp.tanh(c * (x + 0.044715 * x * x * x)))


def _rms_norm(x, w, eps=1e-6):
    ms = jnp.mean(x * x, axis=-1, keepdims=True)
    return x * lax.rsqrt(ms + eps) * w


def _mm_t(x, w):
    """x @ w.T with f32 accumulation (w stored (out_features, in_features))."""
    return lax.dot_general(x, w, (((1,), (1,)), ((), ())),
                           preferred_element_type=jnp.float32)


# --------------------------------------------------------------------------- #
# pass M: modulation  mod[b] = SiLU(vec[b]) @ w_mod.T + b_mod   (col-tiled)
# --------------------------------------------------------------------------- #
def _modulation_kernel(vec_ref, wmod_ref, bmod_ref, mod_ref):
    v = vec_ref[0]                                            # (1, hidden) f32
    sv = (v * jax.nn.sigmoid(v)).astype(jnp.bfloat16)
    m = _mm_t(sv, wmod_ref[...])                              # (1, ct) f32
    mod_ref[0] = m + bmod_ref[...].astype(jnp.float32)


# --------------------------------------------------------------------------- #
# pass N: LayerNorm (no affine) + modulate  ->  xmod (bf16)
# --------------------------------------------------------------------------- #
def _prenorm_kernel(x_ref, mod_ref, xm_ref):
    x = x_ref[0]                                              # (blk, hidden) f32
    m = mod_ref[0]                                            # (3, hidden)  f32
    shift = m[0:1, :]
    scale = m[1:2, :]
    mu = jnp.mean(x, axis=-1, keepdims=True)
    xc = x - mu
    var = jnp.mean(xc * xc, axis=-1, keepdims=True)
    xn = xc * lax.rsqrt(var + 1e-6)
    xm_ref[0] = (xn * (1.0 + scale) + shift).astype(jnp.bfloat16)


# --------------------------------------------------------------------------- #
# pass A: fused linear1 [q|k|v|mlp] (+gelu on mlp cols), weight-stationary
# --------------------------------------------------------------------------- #
def _linear1_kernel(xm_ref, w1_ref, b1_ref, xw_ref, *, n_qkv_col_tiles):
    c = pl.program_id(1)
    res = _mm_t(xm_ref[0], w1_ref[...]) + b1_ref[...].astype(jnp.float32)

    @pl.when(c < n_qkv_col_tiles)                             # q | k | v columns
    def _():
        xw_ref[0] = res.astype(jnp.bfloat16)

    @pl.when(c >= n_qkv_col_tiles)                            # mlp columns
    def _():
        xw_ref[0] = _gelu_tanh(res).astype(jnp.bfloat16)


# --------------------------------------------------------------------------- #
# pass R: per-head q/k preprocessing (rms-norm + rotary + q scale), once/token
# --------------------------------------------------------------------------- #
def _qk_prep_kernel(q_ref, k_ref, cos_ref, sin_ref, qnw_ref, knw_ref,
                    qo_ref, ko_ref, *, head_dim):
    half = head_dim // 2
    scale = float(head_dim) ** -0.5
    cos = cos_ref[...]                                        # (blk, D) f32
    sin = sin_ref[...]                                        # (blk, D) f32 (sign folded)

    q = q_ref[0].astype(jnp.float32)
    q = _rms_norm(q, qnw_ref[...].astype(jnp.float32))
    q = q * cos + pltpu.roll(q, half, 1) * sin
    qo_ref[0] = (q * scale).astype(jnp.bfloat16)

    k = k_ref[0].astype(jnp.float32)
    k = _rms_norm(k, knw_ref[...].astype(jnp.float32))
    k = k * cos + pltpu.roll(k, half, 1) * sin
    ko_ref[0] = k.astype(jnp.bfloat16)


# --------------------------------------------------------------------------- #
# pass B: flash attention (online softmax) per (batch, head, q-tile, kv-tile)
# --------------------------------------------------------------------------- #
def _flash_attn_kernel(q_ref, k_ref, v_ref, o_ref, m_ref, l_ref, acc_ref,
                       *, seq_len, blk_kv):
    kv = pl.program_id(3)

    @pl.when(kv == 0)
    def _():
        m_ref[...] = jnp.full(m_ref.shape, -jnp.inf, jnp.float32)
        l_ref[...] = jnp.zeros(l_ref.shape, jnp.float32)
        acc_ref[...] = jnp.zeros(acc_ref.shape, jnp.float32)

    s = lax.dot_general(q_ref[0], k_ref[0], (((1,), (1,)), ((), ())),
                        preferred_element_type=jnp.float32)   # (blk_q, blk_kv)
    kv_pos = kv * blk_kv + lax.broadcasted_iota(jnp.int32, s.shape, 1)
    s = jnp.where(kv_pos < seq_len, s, -1e30)                 # mask padded keys

    m_prev = m_ref[...]
    m_new = jnp.maximum(m_prev, jnp.max(s, axis=-1, keepdims=True))
    alpha = jnp.exp(m_prev - m_new)
    p = jnp.exp(s - m_new)
    l_ref[...] = alpha * l_ref[...] + jnp.sum(p, axis=-1, keepdims=True)
    acc_ref[...] = alpha * acc_ref[...] + jnp.dot(
        p.astype(jnp.bfloat16), v_ref[0], preferred_element_type=jnp.float32)
    m_ref[...] = m_new

    @pl.when(kv == pl.num_programs(3) - 1)
    def _():
        inv_l = pl.reciprocal(l_ref[...], approx=True)
        o_ref[0] = (acc_ref[...] * inv_l).astype(jnp.bfloat16)


# --------------------------------------------------------------------------- #
# pass C: linear2 ([attn | mlp] @ W2.T, streamed K tiles) + gated residual
# --------------------------------------------------------------------------- #
def _linear2_kernel(attn_ref, mlp_ref, w2_ref, b2_ref, x_ref, mod_ref,
                    out_ref, acc_ref, *, n_attn_k_tiles):
    kk = pl.program_id(2)

    @pl.when(kk == 0)
    def _():
        acc_ref[...] = jnp.zeros(acc_ref.shape, jnp.float32)

    @pl.when(kk < n_attn_k_tiles)                             # attention part
    def _():
        acc_ref[...] += _mm_t(attn_ref[0], w2_ref[...])

    @pl.when(kk >= n_attn_k_tiles)                            # mlp part
    def _():
        acc_ref[...] += _mm_t(mlp_ref[0], w2_ref[...])

    @pl.when(kk == pl.num_programs(2) - 1)
    def _():
        gate = mod_ref[0][2:3, :]                             # (1, hidden) f32
        y = acc_ref[...] + b2_ref[...].astype(jnp.float32)
        out_ref[0] = x_ref[0] + y * gate                      # gated residual


# --------------------------------------------------------------------------- #
# wrapper
# --------------------------------------------------------------------------- #
def _vmem_limit_bytes():
    try:
        cap = int(pltpu.get_tpu_info().vmem_capacity_bytes)
        limit = min(cap - (16 << 20), (cap * 3) // 4)
        return limit if limit >= (32 << 20) else None
    except Exception:
        return None


def mm_single_stream_block(img, txt, vec, freqs_cos, freqs_sin, params,
                           *, heads_num, blk_seq=256, blk_q=512, blk_kv=256,
                           col_tile=None):
    B, img_len, hidden = img.shape
    txt_len = txt.shape[1]
    L = img_len + txt_len
    assert hidden % heads_num == 0
    D = hidden // heads_num
    # TODO(synk): head_dim < 128 would need a different head-slicing layout.
    assert D % 128 == 0, "head_dim must be a multiple of the 128-lane width"

    F = params["w1"].shape[0]
    mlp_hidden = F - 3 * hidden
    assert mlp_hidden > 0 and mlp_hidden % D == 0

    ct = col_tile or (hidden if hidden <= 1024 else 1024)
    assert hidden % ct == 0 and mlp_hidden % ct == 0 and ct % 128 == 0

    blk, bq, bkv = int(blk_seq), int(blk_q), int(blk_kv)
    assert blk % 8 == 0 and bq % 8 == 0 and bkv % 8 == 0
    pad_unit = math.lcm(blk, bq, bkv)
    Lp = ((L + pad_unit - 1) // pad_unit) * pad_unit
    n_seq = Lp // blk
    n_q = Lp // bq
    n_kv = Lp // bkv
    n_col = F // ct
    n_qkv_col = (3 * hidden) // ct
    n_attn_k = hidden // ct
    mlp_base = (3 * hidden) // ct
    n_k = n_attn_k + mlp_hidden // ct
    n_modcol = (3 * hidden) // ct

    f32 = jnp.float32
    bf16 = jnp.bfloat16
    vmem_limit = _vmem_limit_bytes()

    def _cparams(sem):
        return pltpu.CompilerParams(dimension_semantics=sem,
                                    vmem_limit_bytes=vmem_limit)

    # --- wrapper-side (one-time) weight/freq preprocessing -------------------
    # Permute q/k output features (per head) from interleaved-pair order to
    # half-split order so in-kernel rotary is a single pltpu.roll(D//2).
    perm = np.concatenate([np.arange(0, D, 2), np.arange(1, D, 2)])

    w1, b1 = params["w1"], params["b1"]

    def _perm_rows(w_block):                   # (hidden, in) -> per-head permuted
        return w_block.reshape(heads_num, D, w_block.shape[-1])[:, perm, :] \
                      .reshape(hidden, w_block.shape[-1])

    def _perm_cols(v_block):                   # (1, hidden) -> per-head permuted
        return v_block.reshape(heads_num, D)[:, perm].reshape(1, hidden)

    w1p = jnp.concatenate([_perm_rows(w1[:hidden]),
                           _perm_rows(w1[hidden:2 * hidden]),
                           w1[2 * hidden:]], axis=0)
    b1p = jnp.concatenate([_perm_cols(b1[:, :hidden]),
                           _perm_cols(b1[:, hidden:2 * hidden]),
                           b1[:, 2 * hidden:]], axis=1)
    qnw_p = params["q_norm_w"].astype(f32)[:, perm]
    knw_p = params["k_norm_w"].astype(f32)[:, perm]

    # cos/sin extended to the full padded sequence (identity on txt/pad rows),
    # with the rotate-half sign folded into sin.
    sign = jnp.concatenate([-jnp.ones((D // 2,), f32), jnp.ones((D // 2,), f32)])
    cos_img = freqs_cos.astype(f32)[:, perm]
    sin_img = freqs_sin.astype(f32)[:, perm] * sign[None, :]
    cos_full = jnp.concatenate([cos_img, jnp.ones((Lp - img_len, D), f32)], axis=0)
    sin_full = jnp.concatenate([sin_img, jnp.zeros((Lp - img_len, D), f32)], axis=0)

    # concatenated (and zero-padded) residual stream
    x = jnp.concatenate([img.astype(f32), txt.astype(f32)], axis=1)
    if Lp > L:
        x = jnp.concatenate([x, jnp.zeros((B, Lp - L, hidden), f32)], axis=1)
    vec3 = vec.astype(f32).reshape(B, 1, hidden)

    # --- pass M: modulation (column-tiled) ------------------------------------
    mod_flat = pl.pallas_call(
        _modulation_kernel,
        out_shape=jax.ShapeDtypeStruct((B, 1, 3 * hidden), f32),
        grid_spec=pltpu.PrefetchScalarGridSpec(
            num_scalar_prefetch=0,
            grid=(B, n_modcol),
            in_specs=[
                pl.BlockSpec((1, 1, hidden), lambda b, g: (b, 0, 0)),
                pl.BlockSpec((ct, hidden), lambda b, g: (g, 0)),
                pl.BlockSpec((1, ct), lambda b, g: (0, g)),
            ],
            out_specs=pl.BlockSpec((1, 1, ct), lambda b, g: (b, 0, g)),
        ),
        compiler_params=_cparams(("parallel", "parallel")),
    )(vec3, params["w_mod"], params["b_mod"])
    mod = mod_flat.reshape(B, 3, hidden)                      # shift|scale|gate

    # --- pass N: LayerNorm + modulate (once per token) ------------------------
    xmod = pl.pallas_call(
        _prenorm_kernel,
        out_shape=jax.ShapeDtypeStruct((B, Lp, hidden), bf16),
        grid_spec=pltpu.PrefetchScalarGridSpec(
            num_scalar_prefetch=0,
            grid=(B, n_seq),
            in_specs=[
                pl.BlockSpec((1, blk, hidden), lambda b, s: (b, s, 0)),
                pl.BlockSpec((1, 3, hidden), lambda b, s: (b, 0, 0)),
            ],
            out_specs=pl.BlockSpec((1, blk, hidden), lambda b, s: (b, s, 0)),
        ),
        compiler_params=_cparams(("parallel", "parallel")),
    )(x, mod)

    # --- pass A: linear1 (+gelu on mlp cols), weight tile resident over seq ---
    xw = pl.pallas_call(
        functools.partial(_linear1_kernel, n_qkv_col_tiles=n_qkv_col),
        out_shape=jax.ShapeDtypeStruct((B, Lp, F), bf16),
        grid_spec=pltpu.PrefetchScalarGridSpec(
            num_scalar_prefetch=0,
            grid=(B, n_col, n_seq),
            in_specs=[
                pl.BlockSpec((1, blk, hidden), lambda b, c, s: (b, s, 0)),
                pl.BlockSpec((ct, hidden), lambda b, c, s: (c, 0)),      # w1 tile
                pl.BlockSpec((1, ct), lambda b, c, s: (0, c)),           # b1 tile
            ],
            out_specs=pl.BlockSpec((1, blk, ct), lambda b, c, s: (b, s, c)),
        ),
        compiler_params=_cparams(("parallel", "parallel", "arbitrary")),
    )(xmod, w1p, b1p)

    # --- pass R: per-head rms-norm + rotary + q scale (hoisted out of attn) ---
    qh, kh = pl.pallas_call(
        functools.partial(_qk_prep_kernel, head_dim=D),
        out_shape=(jax.ShapeDtypeStruct((B, Lp, hidden), bf16),
                   jax.ShapeDtypeStruct((B, Lp, hidden), bf16)),
        grid_spec=pltpu.PrefetchScalarGridSpec(
            num_scalar_prefetch=0,
            grid=(B, n_seq, heads_num),
            in_specs=[
                pl.BlockSpec((1, blk, D), lambda b, s, h: (b, s, h)),            # q
                pl.BlockSpec((1, blk, D), lambda b, s, h: (b, s, heads_num + h)),# k
                pl.BlockSpec((blk, D), lambda b, s, h: (s, 0)),                  # cos
                pl.BlockSpec((blk, D), lambda b, s, h: (s, 0)),                  # sin
                pl.BlockSpec((1, D), lambda b, s, h: (0, 0)),                    # q_norm_w
                pl.BlockSpec((1, D), lambda b, s, h: (0, 0)),                    # k_norm_w
            ],
            out_specs=[pl.BlockSpec((1, blk, D), lambda b, s, h: (b, s, h)),
                       pl.BlockSpec((1, blk, D), lambda b, s, h: (b, s, h))],
        ),
        compiler_params=_cparams(("parallel", "parallel", "parallel")),
    )(xw, xw, cos_full, sin_full, qnw_p, knw_p)

    # --- pass B: flash attention ----------------------------------------------
    attn = pl.pallas_call(
        functools.partial(_flash_attn_kernel, seq_len=L, blk_kv=bkv),
        out_shape=jax.ShapeDtypeStruct((B, Lp, hidden), bf16),
        grid_spec=pltpu.PrefetchScalarGridSpec(
            num_scalar_prefetch=0,
            grid=(B, heads_num, n_q, n_kv),
            in_specs=[
                pl.BlockSpec((1, bq, D), lambda b, h, qi, kv: (b, qi, h)),
                pl.BlockSpec((1, bkv, D), lambda b, h, qi, kv: (b, kv, h)),
                pl.BlockSpec((1, bkv, D),
                             lambda b, h, qi, kv: (b, kv, 2 * heads_num + h)),
            ],
            out_specs=pl.BlockSpec((1, bq, D), lambda b, h, qi, kv: (b, qi, h)),
            scratch_shapes=[
                pltpu.VMEM((bq, 1), jnp.float32),        # running max
                pltpu.VMEM((bq, 1), jnp.float32),        # running sum
                pltpu.VMEM((bq, D), jnp.float32),        # running accumulator
            ],
        ),
        compiler_params=_cparams(("parallel", "parallel", "parallel", "arbitrary")),
    )(qh, kh, xw)

    # --- pass C: linear2 (streamed K tiles) + gated residual --------------------
    out = pl.pallas_call(
        functools.partial(_linear2_kernel, n_attn_k_tiles=n_attn_k),
        out_shape=jax.ShapeDtypeStruct((B, Lp, hidden), f32),
        grid_spec=pltpu.PrefetchScalarGridSpec(
            num_scalar_prefetch=0,
            grid=(B, n_seq, n_k),
            in_specs=[
                pl.BlockSpec((1, blk, ct),
                             lambda b, s, kk: (b, s, jnp.minimum(kk, n_attn_k - 1))),
                pl.BlockSpec((1, blk, ct),
                             lambda b, s, kk: (b, s, mlp_base +
                                               jnp.maximum(kk - n_attn_k, 0))),
                pl.BlockSpec((hidden, ct), lambda b, s, kk: (0, kk)),   # w2 tile
                pl.BlockSpec((1, hidden), lambda b, s, kk: (0, 0)),     # b2
                pl.BlockSpec((1, blk, hidden), lambda b, s, kk: (b, s, 0)),
                pl.BlockSpec((1, 3, hidden), lambda b, s, kk: (b, 0, 0)),
            ],
            out_specs=pl.BlockSpec((1, blk, hidden), lambda b, s, kk: (b, s, 0)),
            scratch_shapes=[pltpu.VMEM((blk, hidden), jnp.float32)],
        ),
        compiler_params=_cparams(("parallel", "parallel", "arbitrary")),
    )(attn, xw, params["w2"], params["b2"], x, mod)

    img_out = out[:, :img_len, :].astype(img.dtype)
    txt_out = out[:, img_len:L, :].astype(txt.dtype)
    return img_out, txt_out


# --------------------------------------------------------------------------- #
# pure-JAX reference (original weights, interleaved rotary) for a self-check
# --------------------------------------------------------------------------- #
def _reference_forward(img, txt, vec, freqs_cos, freqs_sin, params, heads_num):
    f32, bf16 = jnp.float32, jnp.bfloat16
    B, img_len, hidden = img.shape
    txt_len = txt.shape[1]
    L = img_len + txt_len
    D = hidden // heads_num

    silu_v = (vec * jax.nn.sigmoid(vec)).astype(bf16)
    mod = jnp.einsum("bh,fh->bf", silu_v, params["w_mod"],
                     preferred_element_type=f32) + params["b_mod"].astype(f32)
    shift, scale, gate = mod[:, :hidden], mod[:, hidden:2 * hidden], mod[:, 2 * hidden:]

    x = jnp.concatenate([img.astype(f32), txt.astype(f32)], axis=1)
    mu = jnp.mean(x, -1, keepdims=True)
    xc = x - mu
    var = jnp.mean(xc * xc, -1, keepdims=True)
    xn = xc * lax.rsqrt(var + 1e-6)
    xm = (xn * (1.0 + scale[:, None, :]) + shift[:, None, :]).astype(bf16)

    xw = jnp.einsum("blh,fh->blf", xm, params["w1"],
                    preferred_element_type=f32) + params["b1"].astype(f32)
    q = xw[..., :hidden].astype(bf16).astype(f32).reshape(B, L, heads_num, D)
    k = xw[..., hidden:2 * hidden].astype(bf16).astype(f32).reshape(B, L, heads_num, D)
    v = xw[..., 2 * hidden:3 * hidden].astype(bf16).reshape(B, L, heads_num, D)
    mlp = _gelu_tanh(xw[..., 3 * hidden:]).astype(bf16)

    qnw = params["q_norm_w"].astype(f32)[0]
    knw = params["k_norm_w"].astype(f32)[0]
    q = q * lax.rsqrt(jnp.mean(q * q, -1, keepdims=True) + 1e-6) * qnw
    k = k * lax.rsqrt(jnp.mean(k * k, -1, keepdims=True) + 1e-6) * knw

    def rot_half(t):  # interleaved-pair rotate_half
        t2 = t.reshape(t.shape[:-1] + (D // 2, 2))
        return jnp.stack([-t2[..., 1], t2[..., 0]], axis=-1).reshape(t.shape)

    cos = freqs_cos.astype(f32)[None, :, None, :]
    sin = freqs_sin.astype(f32)[None, :, None, :]
    q_img = q[:, :img_len] * cos + rot_half(q[:, :img_len]) * sin
    k_img = k[:, :img_len] * cos + rot_half(k[:, :img_len]) * sin
    q = jnp.concatenate([q_img, q[:, img_len:]], axis=1)
    k = jnp.concatenate([k_img, k[:, img_len:]], axis=1)

    qb = (q * (float(D) ** -0.5)).astype(bf16)
    kb = k.astype(bf16)
    s = jnp.einsum("blhd,bmhd->bhlm", qb, kb, preferred_element_type=f32)
    p = jax.nn.softmax(s, axis=-1)
    o = jnp.einsum("bhlm,bmhd->blhd", p.astype(bf16), v, preferred_element_type=f32)
    attn = o.astype(bf16).reshape(B, L, hidden)

    y = (jnp.einsum("blk,hk->blh", attn, params["w2"][:, :hidden],
                    preferred_element_type=f32)
         + jnp.einsum("blk,hk->blh", mlp, params["w2"][:, hidden:],
                      preferred_element_type=f32)
         + params["b2"].astype(f32))
    out = x + y * gate[:, None, :]
    return out[:, :img_len].astype(img.dtype), out[:, img_len:].astype(txt.dtype)


# --------------------------------------------------------------------------- #
# test harness
# --------------------------------------------------------------------------- #
if __name__ == "__main__":
    # Small shapes consistent with the module (head_dim kept at the lane-width
    # 128 used in the real model): hidden=256, heads=2, mlp_hidden=1024.
    B = 2
    heads = 2
    head_dim = 128
    hidden = heads * head_dim                  # 256
    mlp_hidden = int(hidden * 4.0)             # 1024
    img_len, txt_len = 48, 13                  # L = 61 -> exercises padding/mask

    key = jax.random.PRNGKey(0)
    ks = jax.random.split(key, 12)

    img = jax.random.normal(ks[0], (B, img_len, hidden), jnp.float32)
    txt = jax.random.normal(ks[1], (B, txt_len, hidden), jnp.float32)
    vec = jax.random.normal(ks[2], (B, hidden), jnp.float32)

    def winit(k, shape, dtype, std=0.02):
        return (std * jax.random.normal(k, shape, jnp.float32)).astype(dtype)

    params = {
        # ModulateDiT: Linear(hidden, 3*hidden) applied to SiLU(vec)
        "w_mod": winit(ks[3], (3 * hidden, hidden), jnp.bfloat16),
        "b_mod": winit(ks[4], (1, 3 * hidden), jnp.float32),
        # linear1: Linear(hidden, 3*hidden + mlp_hidden)
        "w1": winit(ks[5], (3 * hidden + mlp_hidden, hidden), jnp.bfloat16),
        "b1": winit(ks[6], (1, 3 * hidden + mlp_hidden), jnp.float32),
        # q_norm / k_norm: RMSNorm(head_dim) affine weights
        "q_norm_w": 1.0 + 0.05 * jax.random.normal(ks[9], (1, head_dim), jnp.float32),
        "k_norm_w": 1.0 + 0.05 * jax.random.normal(ks[10], (1, head_dim), jnp.float32),
        # linear2: Linear(hidden + mlp_hidden, hidden)
        "w2": winit(ks[7], (hidden, hidden + mlp_hidden), jnp.bfloat16),
        "b2": winit(ks[8], (1, hidden), jnp.float32),
    }

    # interleaved-pair rotary frequencies for the img tokens
    pos = np.arange(img_len, dtype=np.float32)
    inv_freq = 1.0 / (10000.0 ** (np.arange(0, head_dim, 2, dtype=np.float32) / head_dim))
    ang = np.outer(pos, inv_freq)
    freqs_cos = jnp.asarray(np.repeat(np.cos(ang), 2, axis=-1))
    freqs_sin = jnp.asarray(np.repeat(np.sin(ang), 2, axis=-1))

    img_out, txt_out = mm_single_stream_block(
        img, txt, vec, freqs_cos, freqs_sin, params,
        heads_num=heads, blk_seq=32, blk_q=32, blk_kv=32)
    jax.block_until_ready((img_out, txt_out))

    # self-check against a pure-JAX reference with the same precision choices
    ref_img, ref_txt = _reference_forward(img, txt, vec, freqs_cos, freqs_sin,
                                          params, heads)
    np.testing.assert_allclose(np.asarray(img_out), np.asarray(ref_img),
                               rtol=2e-2, atol=2e-2)
    np.testing.assert_allclose(np.asarray(txt_out), np.asarray(ref_txt),
                               rtol=2e-2, atol=2e-2)

    assert img_out.shape == img.shape and img_out.dtype == img.dtype
    assert txt_out.shape == txt.shape and txt_out.dtype == txt.dtype
    assert bool(jnp.all(jnp.isfinite(img_out))) and bool(jnp.all(jnp.isfinite(txt_out)))
    print("KERNEL_OK")
</pallas_src>

<mosaic_0001>
module attributes {stable_mosaic.version = 11 : i64} {
  func.func @_modulation_kernel(%arg0: i32, %arg1: i32, %arg2: memref<1x1x256xf32, #tpu.memory_space<vmem>>, %arg3: memref<256x256xbf16, #tpu.memory_space<vmem>>, %arg4: memref<1x256xf32, #tpu.memory_space<vmem>>, %arg5: memref<1x1x256xf32, #tpu.memory_space<vmem>>) attributes {dimension_semantics = [#tpu.dimension_semantics<parallel>, #tpu.dimension_semantics<parallel>], iteration_bounds = array<i64: 2, 3>, scalar_prefetch = 0 : i64, scratch_operands = 0 : i64, tpu.core_type = #tpu.core_type<tc>, window_params = [{transform_indices = @transform_0, window_bounds = array<i64: 1, 1, 256>}, {transform_indices = @transform_1, window_bounds = array<i64: 256, 256>}, {transform_indices = @transform_2, window_bounds = array<i64: 1, 256>}, {transform_indices = @transform_3, window_bounds = array<i64: 1, 1, 256>}]} {
    %c0 = arith.constant 0 : index
    %c0_0 = arith.constant 0 : index
    %c0_1 = arith.constant 0 : index
    %0 = vector.load %arg2[%c0, %c0_0, %c0_1] : memref<1x1x256xf32, #tpu.memory_space<vmem>>, vector<1x1x256xf32>
    %1 = vector.shape_cast %0 : vector<1x1x256xf32> to vector<1x256xf32>
    %2 = arith.negf %1 : vector<1x256xf32>
    %3 = math.exp %2 : vector<1x256xf32>
    %cst = arith.constant 1.000000e+00 : f32
    %4 = vector.broadcast %cst : f32 to vector<1x256xf32>
    %5 = arith.addf %4, %3 : vector<1x256xf32>
    %6 = arith.divf %4, %5 : vector<1x256xf32>
    %7 = arith.mulf %1, %6 : vector<1x256xf32>
    %8 = arith.truncf %7 : vector<1x256xf32> to vector<1x256xbf16>
    %c0_2 = arith.constant 0 : index
    %c0_3 = arith.constant 0 : index
    %9 = vector.load %arg3[%c0_2, %c0_3] : memref<256x256xbf16, #tpu.memory_space<vmem>>, vector<256x256xbf16>
    %cst_4 = arith.constant dense<0.000000e+00> : vector<1x256xf32>
    %10 = tpu.matmul %8, %9, %cst_4 {dimension_numbers = #tpu.dot_dimension_numbers<[1], [1], [0], [0], [0, 0, 1, 0], [], []>} : vector<1x256xbf16>, vector<256x256xbf16>, vector<1x256xf32> -> vector<1x256xf32>
    %c0_5 = arith.constant 0 : index
    %c0_6 = arith.constant 0 : index
    %11 = vector.load %arg4[%c0_5, %c0_6] : memref<1x256xf32, #tpu.memory_space<vmem>>, vector<1x256xf32>
    %12 = arith.addf %10, %11 : vector<1x256xf32>
    %c0_7 = arith.constant 0 : index
    %c0_8 = arith.constant 0 : index
    %c0_9 = arith.constant 0 : index
    %13 = vector.load %arg5[%c0_7, %c0_8, %c0_9] : memref<1x1x256xf32, #tpu.memory_space<vmem>>, vector<1x1x256xf32>
    %14 = vector.shape_cast %13 : vector<1x1x256xf32> to vector<1x256xf32>
    %15 = vector.shape_cast %12 : vector<1x256xf32> to vector<1x1x256xf32>
    tpu.vector_store %arg5[%c0_7, %c0_8, %c0_9], %15 {strides = array<i32>} : memref<1x1x256xf32, #tpu.memory_space<vmem>>, vector<1x1x256xf32>,
    return
  }
  func.func @transform_0(%arg0: i32, %arg1: i32) -> (i32, i32, i32) {
    %c0_i32 = arith.constant 0 : i32
    %c0_i32_0 = arith.constant 0 : i32
    %c0_i32_1 = arith.constant 0 : i32
    return %arg0, %c0_i32, %c0_i32_0 : i32, i32, i32
  }
  func.func @transform_1(%arg0: i32, %arg1: i32) -> (i32, i32) {
    %c0_i32 = arith.constant 0 : i32
    %c0_i32_0 = arith.constant 0 : i32
    return %arg1, %c0_i32 : i32, i32
  }
  func.func @transform_2(%arg0: i32, %arg1: i32) -> (i32, i32) {
    %c0_i32 = arith.constant 0 : i32
    %c0_i32_0 = arith.constant 0 : i32
    return %c0_i32, %arg1 : i32, i32
  }
  func.func @transform_3(%arg0: i32, %arg1: i32) -> (i32, i32, i32) {
    %c0_i32 = arith.constant 0 : i32
    %c0_i32_0 = arith.constant 0 : i32
    return %arg0, %c0_i32, %arg1 : i32, i32, i32
  }
}

</mosaic_0001>

<bundles_post_ra>
// kernel: tpu_custom_call.1
= control target key start
LH: loop header
LB: loop body
LE: loop exit
PB: predicated region body
PF: predicated region fallthrough
CT: control target
= control target key end

     0   :  { %s1556_s0 = inlined_call_operand.hbm [shape: f32[2,1,256], index: 0, kind: input, shape index: {}]   ;;  %s1557_s1 = inlined_call_operand.hbm [shape: bf16[768,256], index: 1, kind: input, shape index: {}]   ;;  %s1558_s2 = inlined_call_operand.hbm [shape: f32[1,768], index: 2, kind: input, shape index: {}]   ;;  %s1559_s3 = inlined_call_operand.hbm [shape: f32[2,1,768], index: 3, kind: output, shape index: {}]  }
   0x1   :  { %1570 = sst [smem:[#allocation22_spill]] %s1556_s0 }
   0x2   :  { %1571 = sst [smem:[#allocation23_spill]] %s1557_s1 }
   0x3   :  { %1572 = sst [smem:[#allocation24_spill]] %s1559_s3 }
   0x4   :  { %8 = vsyncpa [#allocation3], 0 }
   0x5   :  { %10 = vsyncpa [#allocation3 + $0x1], 0 }
   0x6   :  { %11 = vsyncpa [#allocation6], 0 }
   0x7   :  { %13 = vsyncpa [#allocation6 + $0x1], 0 }
   0x8   :  { %14 = vsyncpa [#allocation4], 0 }
   0x9   :  { %16 = vsyncpa [#allocation4 + $0x1], 0  ;;  %s1227_s12 = smov 0   ;;  %s1229_s13 = smov 0  }
   0xa   :  { %s1231_s14 = smov 0   ;;  %s1233_s15 = smov 0  }
   0xb   :  { %s1235_s16 = smov 0   ;;  %s1237_s17 = smov 0  }
   0xc   :  { %s1239_s18 = smov 0   ;;  %s1241_s19 = smov 0  }
   0xd   :  { %s1243_s20 = smov 0   ;;  %s1245_s21 = smov 0  }
   0xe   :  { %s1247_s22 = smov 0   ;;  %s1249_s23 = smov 0  }
   0xf   :  { %s1251_s24 = smov 0   ;;  %s1253_s25 = smov 0  }
  0x10 LB: > { %1573 = sst [smem:[#allocation12_spill]] %s1178_s20  ;;  %p49_p0 = scmp.eq.s32.totalorder %s1198_s25, 0  ;;  %s1198_s25 = sphi %s1253_s25, %s22_s25   ;;  %s1194_s24 = sphi %s1251_s24, %s1620_s24   ;;  %s1190_s23 = sphi %s1249_s23, %s1619_s23   ;;  %s1186_s22 = sphi %s1247_s22, %s1607_s22   ;;  %s1182_s21 = sphi %s1245_s21, %s1618_s21   ;;  %s1178_s20 = sphi %s1243_s20, %s1606_s20   ;;  %s1174_s19 = sphi %s1241_s19, %s1617_s19   ;;  %s1170_s18 = sphi %s1239_s18, %s1616_s18   ;;  %s1166_s17 = sphi %s1237_s17, %s1615_s17   ;;  %s1162_s16 = sphi %s1235_s16, %s1614_s16   ;;  %s1158_s15 = sphi %s1233_s15, %s1613_s15   ;;  %s1154_s14 = sphi %s1231_s14, %s1612_s14   ;;  %s1150_s13 = sphi %s1229_s13, %s1611_s13   ;;  %s1146_s12 = sphi %s1227_s12, %s1610_s12  }
  0x11   : > { %1574 = sst [smem:[#allocation13_spill]] %s1182_s21  ;;  %p74_p1 = scmp.ne.s32.totalorder %s1166_s17, %s1162_s16 }
  0x12   : > { %1575 = sst [smem:[#allocation14_spill]] %s1186_s22  ;;  %p80_p2 = scmp.ne.s32.totalorder %s1162_s16, %s1158_s15 }
  0x13   : > { %1576 = sst [smem:[#allocation15_spill]] %s1194_s24  ;;  %p1567_p3 = scmp.lt.s32.totalorder %s1198_s25, 6 }
  0x14   : > { %p76_p4 = por %p74_p1, %p49_p0  ;;  %s177_s27 = sand.u32 1, %s1198_s25  }
  0x15   : > { %s1560_s28 = sand.u32 1, %s1166_s17   ;;  %s772_s30 = sshll.u32 %s1190_s23, 12 }
  0x16   : > { %s720_s29 = sshll.u32 %s1560_s28, 8  ;;  %s1577_s1 = sld [smem:[#allocation23_spill]] }
  0x17   : > { %s181_s7 = scalar_lea.vmem [#allocation5], %s720_s29  ;;  %p1316_p5 = pnand %p1567_p3, %p76_p4 }
  0x18   : > { %s189_s8 = sshll.u32 %s181_s7, 4  ;;  %s1320_s10 = scalar_lea.sflag [#allocation6], %s177_s27  ;;  %s190_s8 = int_to_ptr.vmem [resolvable:$true] %s189_s8 }
  0x19   : > { %p1563_p6 = pneg %p1316_p5  ;;  %s979_s11 = scalar_lea.vmem %s190_s8, 4096 }
  0x1a   : > { %p980_p7 = scmp.ne.s32.totalorder %s190_s8, %s979_s11  ;;  %s1200_s29 = smov [#allocation5]  }
  0x1c   : > { %s188_s6 = scalar_lea.hbm %s1577_s1, %s772_s30  ;;  %p982_p8 = pnand %p980_p7, %p1563_p6 }
  0x1d   : > { %s984_s30 = sshll.u32 %s1200_s29, 4  ;;  %s985_s30 = int_to_ptr.vmem [resolvable:$false] %s984_s30 }
  0x1e   : > { %p983_p9 = pneg %p982_p8  ;;  %s986_s4 = scalar_lea.vmem %s985_s30, 8192 }
  0x1f   : > { %p987_p10 = scmp.lt.s32.totalorder %s190_s8, %s985_s30  ;;  %p988_p11 = scmp.lt.s32.totalorder %s986_s4, %s979_s11 }
  0x21   : > { %p989_p12 = por %p988_p11, %p987_p10 }
  0x23   : > { %p990_p13 = pnand %p989_p12, %p983_p9 }
  0x25   : > { %993 = shalt.err (!%p990_p13)
}
  0x26   : > { %s1201_s5 = smov 128   ;;  %s1202_s27 = smov 8  }
  0x27   : > { %789 = dma.hbm_to_vmem [thread:$0]  (!%p1316_p5), %s188_s6, 4096, %s190_s8, %s1320_s10, %s1201_s5, %s1201_s5, %s1202_s27  }
  0x28   : > { %p727_p1 = scmp.ge.s32.totalorder %s1198_s25, 1  ;;  %p216_p4 = scmp.lt.s32.totalorder %s1198_s25, 7 }
  0x29   : > { %s1337_s11 = sadd.s32 4294967295, %s1198_s25   ;;  %s714_s29 = sadd.s32 4294967294, %s1198_s25  }
  0x2a   : > { %p1332_p7 = pnand %p727_p1, %p216_p4  ;;  %s31_s30 = sadd.s32 1, %s1190_s23 }
  0x2b   : > { %p32_p8 = scmp.ge.s32.totalorder %s31_s30, 3  ;;  %s34_s4 = sadd.s32 1, %s1194_s24 }
  0x2c   : > { %s41_s28 = sadd.s32 1, %s1178_s20  ;;  %p48_p9 = scmp.ne.s32.totalorder %s1178_s20, %s1174_s19 }
  0x2d   : > { %s1622_s30 = smov (%p32_p8, %s31_s30), 0  ;;  %s1624_s4 = smov (!%p32_p8, %s34_s4), %s1194_s24 }
  0x2e   : > { %1580 = sst [smem:[#allocation16_spill]] %s1622_s30  ;;  %p1350_p10 = por %p49_p0, %p48_p9 }
  0x2f   : > { %p54_p11 = scmp.ne.s32.totalorder %s1174_s19, %s1170_s18  ;;  %p36_p12 = scmp.ge.s32.totalorder %s1624_s4, 2 }
  0x30   : > { %p55_p13 = scmp.eq.s32.totalorder %s1337_s11, 0  ;;  %s64_s8 = ssub.s32 %s1190_s23, %s1622_s30 }
  0x31   : > { %s121_s5 = sadd.s32 1, %s1154_s14  ;;  %s1626_s4 = smov (%p36_p12, %s1624_s4), 0 }
  0x32   : > { %1582 = sst [smem:[#allocation17_spill]] %s1626_s4  ;;  %p1362_p1 = por %p55_p13, %p54_p11 }
  0x33   : > { %p65_p0 = scmp.eq.s32.totalorder %s64_s8, 0  ;;  %s38_s26 = ssub.s32 %s1194_s24, %s1626_s4 }
  0x34   : > { %p1371_p4 = por %p80_p2, %p55_p13  ;;  %p39_p8 = scmp.eq.s32.totalorder %s38_s26, 0 }
  0x35   : > { %s118_s1 = sor.u32 %s64_s8, %s38_s26  ;;  %s1586_s30 = sadd.s32 1, %s1166_s17 }
  0x36   : > { %s1584_s18 = scalar_select %p1371_p4, 1, 0 }
  0x37   : > { %s1378_s3 = scalar_select %p65_p0, %s1166_s17, %s1586_s30  }
  0x38   : > { %1585 = sst [smem:[#allocation18_spill]] %s1584_s18  ;;  %p119_p9 = scmp.eq.s32.totalorder %s118_s1, 0 }
  0x39   : > { %1587 = sst [smem:[#allocation19_spill]] %s1378_s3  ;;  %p131_p11 = scmp.ne.s32.totalorder %s1154_s14, %s1150_s13 }
  0x3a   : > { %s1381_s21 = scalar_select %p39_p8, %s1178_s20, %s41_s28  }
  0x3b   : > { %p132_p12 = scmp.eq.s32.totalorder %s1337_s11, 5  ;;  %p137_p6 = scmp.ne.s32.totalorder %s1150_s13, %s1146_s12 }
  0x3c   : > { %1588 = sst [smem:[#allocation20_spill]] %s1381_s21  ;;  %p138_p13 = scmp.eq.s32.totalorder %s714_s29, 5 }
  0x3d   : > { %s1389_s4 = scalar_select %p119_p9, %s1154_s14, %s121_s5  }
  0x3e   : > { %p1391_p2 = por %p132_p12, %p131_p11  ;;  %s158_s22 = sand.u32 1, %s1178_s20  }
  0x3f   : > { %1589 = sst [smem:[#allocation21_spill]] %s1389_s4  ;;  %s770_s18 = sshll.u32 %s1194_s24, 5 }
  0x40   : > { %p1397_p3 = por %p138_p13, %p137_p6  ;;  %s717_s28 = sshll.u32 %s158_s22, 1 }
  0x41   : > { %s1592_s0 = sld [smem:[#allocation22_spill]]  ;;  %p1593_p0 = scmp.lt.s32.totalorder %s1198_s25, 6 }
  0x42   : > { %s1591_s26 = scalar_select %p1397_p3, 1, 0 }
  0x43   : > { %p1408_p8 = pnand %p1593_p0, %p1350_p10  ;;  %s162_s21 = scalar_lea.vmem [#allocation2], %s717_s28 }
  0x44   : > { %s170_s29 = sshll.u32 %s162_s21, 4  ;;  %s1595_s20 = sand.u32 1, %s1166_s17   ;;  %s171_s29 = int_to_ptr.vmem [resolvable:$true] %s170_s29 }
  0x45   : > { %s724_s24 = sshll.u32 %s1595_s20, 1  ;;  %s159_s3 = scalar_lea.sflag [#allocation3], %s158_s22 }
  0x46   : > { %p996_p6 = pneg %p1408_p8  ;;  %s1007_s4 = scalar_lea.vmem %s171_s29, 32 }
  0x47   : > { %s168_s1 = scalar_lea.hbm %s1592_s0, %s770_s18  ;;  %p1008_p9 = scmp.ne.s32.totalorder %s171_s29, %s1007_s4 }
  0x48   : > { %s1203_s18 = smov [#allocation2]  }
  0x49   : > { %p1010_p11 = pnand %p1008_p9, %p996_p6  ;;  %s1012_s6 = sshll.u32 %s1203_s18, 4  ;;  %s1013_s6 = int_to_ptr.vmem [resolvable:$false] %s1012_s6 }
  0x4a   : > { %s1014_s30 = scalar_lea.vmem %s1013_s6, 64  ;;  %p1015_p10 = scmp.lt.s32.totalorder %s171_s29, %s1013_s6 }
  0x4b   : > { %p1011_p12 = pneg %p1010_p11  ;;  %p1016_p13 = scmp.lt.s32.totalorder %s1014_s30, %s1007_s4 }
  0x4d   : > { %p1017_p0 = por %p1016_p13, %p1015_p10 }
  0x4f   : > { %p1018_p3 = pnand %p1017_p0, %p1011_p12 }
  0x51   : > { %1021 = shalt.err (!%p1018_p3)
}
  0x52   : > { %786 = dma.hbm_to_vmem [thread:$0]  (!%p1408_p8), %s168_s1, 32, %s171_s29, %s159_s3  }
  0x53   : > { %s773_s20 = sshll.u32 %s1190_s23, 5  ;;  %s203_s8 = scalar_lea.vmem [#allocation7], %s724_s24 }
  0x54   : > { %s209_s28 = scalar_lea.hbm %s1558_s2, %s773_s20  ;;  %s211_s0 = sshll.u32 %s203_s8, 4  ;;  %s212_s0 = int_to_ptr.vmem [resolvable:$true] %s211_s0 }
  0x55   : > { %s1035_s18 = scalar_lea.vmem %s212_s0, 32  ;;  %p1596_p9 = pneg %p1316_p5 }
  0x56   : > { %p1036_p6 = scmp.ne.s32.totalorder %s212_s0, %s1035_s18  ;;  %s1204_s4 = smov [#allocation7]  }
  0x57   : > { %s1040_s6 = sshll.u32 %s1204_s4, 4  ;;  %s1041_s6 = int_to_ptr.vmem [resolvable:$false] %s1040_s6 }
  0x58   : > { %p1038_p11 = pnand %p1036_p6, %p1596_p9  ;;  %s1042_s5 = scalar_lea.vmem %s1041_s6, 64 }
  0x59   : > { %p1043_p3 = scmp.lt.s32.totalorder %s212_s0, %s1041_s6  ;;  %p1044_p8 = scmp.lt.s32.totalorder %s1042_s5, %s1035_s18 }
  0x5a   : > { %p1039_p12 = pneg %p1038_p11 }
  0x5b   : > { %p1045_p10 = por %p1044_p8, %p1043_p3 }
  0x5d   : > { %p1046_p13 = pnand %p1045_p10, %p1039_p12 }
  0x5f   : > { %1049 = shalt.err (!%p1046_p13)
}
  0x60   : > { %792 = dma.hbm_to_vmem [thread:$0]  (!%p1316_p5), %s209_s28, 32, %s212_s0, %s1320_s10  }
  0x61   : > { %220 = sbr.rel (%p1332_p7) target bundleno = 452 (0x1c4), region = 32  ;;  %s222_s3 = sand.u32 (!%p1332_p7), 1, %s1174_s19  }
  0x62   : > { %s728_s24 = sshll.u32 (!%p1332_p7), %s222_s3, 1  ;;  %s223_s1 = scalar_lea.sflag (!%p1332_p7), [#allocation3], %s222_s3 }
  0x63   : > { %s226_s29 = scalar_lea.vmem (!%p1332_p7), [#allocation2], %s728_s24 }
  0x66   : > { %1133 = dma.done.wait (%p1362_p1), %s223_s1, 32  }
  0x67   : > { %1135 = vsyncadd (%p1362_p1), %s223_s1, 4294967264  ;;  %s231_s30 = sand.u32 1, %s1337_s11   ;;  %s233_s0 = sand.u32 1, %s1162_s16  }
  0x68   : > { %s729_s10 = sshll.u32 %s233_s0, 8  ;;  %s232_s7 = scalar_lea.sflag [#allocation6], %s231_s30 }
  0x69   : > { %s1439_s20 = scalar_lea.vmem [#allocation5], %s729_s10 }
  0x6a   : > { %1137 = dma.done.wait (%p1371_p4), %s232_s7, 4128  }
  0x6b   : > { %1139 = vsyncadd (%p1371_p4), %s232_s7, 4294963168  ;;  %v914_v0 = vld [vmem:[%s1439_s20 + $0x74] ss:$8 sps:$4 sm:$0xff]   ;;  %v916_v1 = vld [vmem:[%s1439_s20 + $0x70] ss:$8 sps:$4 sm:$0xff]   ;;  %v289_v17 = vlaneseq  ;;  %s1598_s11 = sld [smem:[#allocation14_spill]] }
  0x6c   : > { %505 = vmatprep.subr.bf16.mxu0 %v914_v0  ;;  %v917_v2 = vld [vmem:[%s1439_s20 + $0x64] ss:$8 sps:$4 sm:$0xff]   ;;  %v919_v3 = vld [vmem:[%s1439_s20 + $0x60] ss:$8 sps:$4 sm:$0xff]   ;;  %v920_v4 = vld [vmem:[%s1439_s20 + $0x54] ss:$8 sps:$4 sm:$0xff]  }
  0x6d   : > { %506 = vmatpush1.bf16.xpose.msra.mxu0 %v916_v1  ;;  %v922_v5 = vld [vmem:[%s1439_s20 + $0x50] ss:$8 sps:$4 sm:$0xff]   ;;  %v923_v6 = vld [vmem:[%s1439_s20 + $0x44] ss:$8 sps:$4 sm:$0xff]   ;;  %v280_v7 = vld [vmem:[%s226_s29] sm:$0x3] }
  0x6e   : > { %507 = vmatprep.subr.bf16.mxu0 %v917_v2  ;;  %v732_v8 = vmul.f32 -1.442695, %v280_v7  ;;  %v925_v9 = vld [vmem:[%s1439_s20 + $0x40] ss:$8 sps:$4 sm:$0xff]   ;;  %v926_v10 = vld [vmem:[%s1439_s20 + $0x34] ss:$8 sps:$4 sm:$0xff]  }
  0x6f   : > { %v928_v11 = vld [vmem:[%s1439_s20 + $0x30] ss:$8 sps:$4 sm:$0xff]   ;;  %v929_v12 = vld [vmem:[%s1439_s20 + $0x24] ss:$8 sps:$4 sm:$0xff]   ;;  %v931_v15 = vld [vmem:[%s1439_s20 + $0x20] ss:$8 sps:$4 sm:$0xff]  }
  0x70   : > { %962 = vpow2.f32 %v732_v8  ;;  %v932_v16 = vld [vmem:[%s1439_s20 + $0x14] ss:$8 sps:$4 sm:$0xff]   ;;  %v934_v18 = vld [vmem:[%s1439_s20 + $0x10] ss:$8 sps:$4 sm:$0xff]   ;;  %v935_v19 = vld [vmem:[%s1439_s20 + $0x4] ss:$8 sps:$4 sm:$0xff]  }
  0x71   : > { %v1461_v20 = vshrl.u32 %v289_v17, 7  ;;  %v937_v24 = vld [vmem:[%s1439_s20] ss:$8 sps:$4 sm:$0xff]   ;;  %v938_v25 = vld [vmem:[%s1439_s20 + $0xf4] ss:$8 sps:$4 sm:$0xff]   ;;  %s1599_s27 = sld [smem:[#allocation13_spill]] }
  0x72   : > { %v940_v28 = vld [vmem:[%s1439_s20 + $0xf0] ss:$8 sps:$4 sm:$0xff]   ;;  %v941_v29 = vld [vmem:[%s1439_s20 + $0xe4] ss:$8 sps:$4 sm:$0xff]   ;;  %v943_v30 = vld [vmem:[%s1439_s20 + $0xe0] ss:$8 sps:$4 sm:$0xff]  }
  0x73   : > { %v295_v21 = vsub.s32 1, %v1461_v20  ;;  %v944_v31 = vld [vmem:[%s1439_s20 + $0xd4] ss:$8 sps:$4 sm:$0xff]   ;;  %v946_v32 = vld [vmem:[%s1439_s20 + $0xd0] ss:$8 sps:$4 sm:$0xff]   ;;  %v291_v42 = vsub.s32 0, %v1461_v20 }
  0x74   : > { %v947_v33 = vld [vmem:[%s1439_s20 + $0xc4] ss:$8 sps:$4 sm:$0xff]   ;;  %v949_v34 = vld [vmem:[%s1439_s20 + $0xc0] ss:$8 sps:$4 sm:$0xff]   ;;  %v950_v35 = vld [vmem:[%s1439_s20 + $0xb4] ss:$8 sps:$4 sm:$0xff]  }
  0x75   : > { %508 = vmatpush1.bf16.xpose.msra.mxu0 %v919_v3  ;;  %v952_v36 = vld [vmem:[%s1439_s20 + $0xb0] ss:$8 sps:$4 sm:$0xff]   ;;  %v953_v37 = vld [vmem:[%s1439_s20 + $0xa4] ss:$8 sps:$4 sm:$0xff]   ;;  %v955_v38 = vld [vmem:[%s1439_s20 + $0xa0] ss:$8 sps:$4 sm:$0xff]  }
  0x76   : > { %509 = vmatprep.subr.bf16.mxu0 %v920_v4  ;;  %v956_v39 = vld [vmem:[%s1439_s20 + $0x94] ss:$8 sps:$4 sm:$0xff]   ;;  %v958_v40 = vld [vmem:[%s1439_s20 + $0x90] ss:$8 sps:$4 sm:$0xff]   ;;  %v959_v41 = vld [vmem:[%s1439_s20 + $0x84] ss:$8 sps:$4 sm:$0xff]  }
  0x77   : > { %v961_v43 = vld [vmem:[%s1439_s20 + $0x80] ss:$8 sps:$4 sm:$0xff]   ;;  %s730_s21 = sshll.u32 %s233_s0, 1  ;;  %v1205_v46 = vmov 1966171168   ;;  %s274_s28 = sand.u32 1, %s1150_s13  }
  0x78   : > { %v550_v47 = vunpack.c.l.s4 %v1205_v46  ;;  %s244_s22 = scalar_lea.vmem [#allocation7], %s730_s21  ;;  %s774_s8 = smul.u32 6, %s1598_s11  ;;  %vm566_vm0 = vcmp.lt.s32.totalorder %v289_v17, 256 }
  0x79   : > { %v333_v48 = vld [vmem:[%s244_s22] sm:$0x3]  ;;  %s731_s18 = sshll.u32 %s274_s28, 1  ;;  %s766_s4 = sshll.u32 %s1599_s27, 1 }
  0x7a   : > { %v498_v49 = vrot.slane %v333_v48, %v291_v42  ;;  %v502_v50 = vrot.slane %v333_v48, %v295_v21  ;;  %v551_v51 = vunpack.c.0.s8 %v550_v47  ;;  %s582_s6 = sadd.s32 %s774_s8, %s766_s4  ;;  %s276_s3 = scalar_lea.vmem [#allocation8], %s731_s18 }
  0x7b   : > { %s767_s5 = sshll.u32 %s582_s6, 4  ;;  %s586_s24 = sshll.u32 %s276_s3, 4  ;;  %s587_s24 = int_to_ptr.vmem [resolvable:$true] %s586_s24 }
  0x7c   : > { %v554_v56 = vsub.s32 %v551_v51, %v1461_v20  ;;  %s1600_s9 = sld [smem:[#allocation24_spill]]  ;;  %s570_s0 = scalar_lea.sflag [#allocation4], %s274_s28 }
  0x7d   : > { %510 = vmatpush1.bf16.xpose.msra.mxu0 %v922_v5  ;;  %v963_v13 = vpop.eup %962  ;;  %s1050_s10 = scalar_lea.vmem %s587_s24, 32  ;;  %s1206_s7 = smov [#allocation8]  }
  0x7e   : > { %511 = vmatprep.subr.bf16.mxu0 %v923_v6  ;;  %v284_v14 = vadd.f32 1.0, %v963_v13  ;;  %p1051_p5 = scmp.ne.s32.totalorder %s587_s24, %s1050_s10  ;;  %s1054_s20 = sshll.u32 %s1206_s7, 4  ;;  %s1055_s20 = int_to_ptr.vmem [resolvable:$false] %s1054_s20 }
  0x7f   : > { %s1056_s11 = scalar_lea.vmem %s1055_s20, 64  ;;  %p1057_p4 = scmp.lt.s32.totalorder %s587_s24, %s1055_s20 }
  0x80   : > { %964 = vrcp.f32 %v284_v14  ;;  %p1052_p7 = pnand %p1051_p5, %p1391_p2  ;;  %p1058_p0 = scmp.lt.s32.totalorder %s1056_s11, %s1050_s10 }
  0x82   : > { %s584_s30 = scalar_lea.hbm %s1600_s9, %s767_s5  ;;  %p1053_p1 = pneg %p1052_p7 }
  0x83   : > { %p1059_p6 = por %p1058_p0, %p1057_p4 }
  0x85   : > { %512 = vmatpush1.bf16.xpose.msra.mxu0 %v925_v9  ;;  %p1060_p9 = pnand %p1059_p6, %p1053_p1 }
  0x86   : > { %513 = vmatprep.subr.bf16.mxu0 %v926_v10 }
  0x8d   : > { %514 = vmatpush1.bf16.xpose.msra.mxu0 %v928_v11  ;;  %v965_v22 = vpop.eup %964 }
  0x8e   : > { %515 = vmatprep.subr.bf16.mxu0 %v929_v12  ;;  %v287_v23 = vmul.f32 %v965_v22, %v280_v7 }
  0x90   : > { %v296_v26 = vrot.slane %v287_v23, %v295_v21  ;;  %v292_v44 = vrot.slane %v287_v23, %v291_v42 }
  0x92   : > { %v300_v27 = vpack.c.bf16 %v296_v26, %v296_v26  ;;  %v299_v45 = vpack.c.bf16 %v292_v44, %v292_v44 }
  0x94   : > { %537 = vmatprep.mubr.bf16.mxu0 %v300_v27 }
  0x95   : > { %516 = vmatpush1.bf16.xpose.msra.mxu0 %v931_v15 }
  0x96   : > { %517 = vmatprep.subr.bf16.mxu0 %v932_v16 }
  0x9d   : > { %518 = vmatpush1.bf16.xpose.msra.mxu0 %v934_v18 }
  0x9e   : > { %519 = vmatprep.subr.bf16.mxu0 %v935_v19 }
  0xa5   : > { %520 = vmatpush1.bf16.xpose.msra.mxu0 %v937_v24 }
  0xa6   : > { %521 = vmatprep.subr.bf16.mxu0 %v938_v25 }
  0xad   : > { %522 = vmatpush2.bf16.xpose.msra.mxu0 %v940_v28 }
  0xae   : > { %523 = vmatprep.subr.bf16.mxu0 %v941_v29 }
  0xb5   : > { %524 = vmatpush2.bf16.xpose.msra.mxu0 %v943_v30 }
  0xb6   : > { %525 = vmatprep.subr.bf16.mxu0 %v944_v31 }
  0xbd   : > { %526 = vmatpush2.bf16.xpose.msra.mxu0 %v946_v32 }
  0xbe   : > { %527 = vmatprep.subr.bf16.mxu0 %v947_v33 }
  0xc5   : > { %528 = vmatpush2.bf16.xpose.msra.mxu0 %v949_v34 }
  0xc6   : > { %529 = vmatprep.subr.bf16.mxu0 %v950_v35 }
  0xcd   : > { %530 = vmatpush2.bf16.xpose.msra.mxu0 %v952_v36 }
  0xce   : > { %531 = vmatprep.subr.bf16.mxu0 %v953_v37 }
  0xd5   : > { %532 = vmatpush2.bf16.xpose.msra.mxu0 %v955_v38 }
  0xd6   : > { %533 = vmatprep.subr.bf16.mxu0 %v956_v39 }
  0xdd   : > { %534 = vmatpush2.bf16.xpose.msra.mxu0 %v958_v40 }
  0xde   : > { %535 = vmatprep.subr.bf16.mxu0 %v959_v41 }
  0xe5   : > { %536 = vmatpush2.bf16.xpose.msra.mxu0 %v961_v43 }
  0xec   : > { %538 = vmatmul.mubr.bf16.vlgmr.msra.gmra.mxu0 %v299_v45 }
 0x1ac   : > { %v539_v52 = vpop.f32.mrf.mxu0 }
 0x1ad   : > { %v540_v54 = vadd.f32 %v539_v52, %v498_v49 }
 0x1ae   : > { %v541_v53 = vpop.f32.mrf.mxu0 }
 0x1af   : > { %v542_v55 = vadd.f32 %v541_v53, %v502_v50 }
 0x1b0   : > { %v543_v57 = vpop.f32.mrf.mxu0 }
 0x1b1   : > { %v548_v58 = vcombine.low %v540_v54, %v542_v55 }
 0x1b2   : > { %v544_v59 = vpop.f32.mrf.mxu0 }
 0x1b3   : > { %v555_v60 = vrot.slane %v548_v58, %v554_v56 }
 0x1b5   : > { %v562_v61 = vrot.slane %v555_v60, %v554_v56 }
 0x1b7   : > { %568 = vst.msk [vmem:[%s276_s3] sm:$0x3] %vm566_vm0, %v562_v61 }
 0x1b8   : > { %1063 = shalt.err (!%p1060_p9)
}
 0x1b9   : > { %s1064_s27 = scalar_lea.hbm %s584_s30, 32  ;;  %s1068_s28 = scalar_lea.hbm %s1600_s9, 192 }
 0x1ba   : > { %p1065_p11 = scmp.ne.s32.totalorder %s584_s30, %s1064_s27  ;;  %p1069_p8 = scmp.lt.s32.totalorder %s584_s30, %s1600_s9 }
 0x1bb   : > { %p1070_p10 = scmp.lt.s32.totalorder %s1068_s28, %s1064_s27 }
 0x1bc   : > { %p1066_p12 = pnand %p1065_p11, %p1391_p2 }
 0x1bd   : > { %p1071_p13 = por %p1070_p10, %p1069_p8 }
 0x1be   : > { %p1067_p3 = pneg %p1066_p12 }
 0x1c0   : > { %p1072_p5 = pnand %p1071_p13, %p1067_p3 }
 0x1c2   : > { %1075 = shalt.err (!%p1072_p5)
}
 0x1c3   : > { %781 = dma.vmem_to_hbm [thread:$0]  (%p1391_p2), %s587_s24, 32, %s584_s30, %s570_s0  }
 0x1c4 PF: > { %p798_p7 = scmp.ge.s32.totalorder %s1198_s25, 2  ;;  %s598_s4 = sand.u32 1, %s1146_s12  }
 0x1c5   : > { %p1601_p1 = scmp.ne.s32.totalorder %s1591_s26, 0  ;;  %s599_s6 = scalar_lea.sflag [#allocation4], %s598_s4 }
 0x1c7   : > { %p794_p4 = pnand %p798_p7, %p1601_p1 }
 0x1c9   : > { %p795_p0 = pneg %p794_p4 }
 0x1cb   : > { %1141 = dma.done.wait (%p795_p0), %s599_s6, 32  }
 0x1cc   : > { %1143 = vsyncadd (%p795_p0), %s599_s6, 4294967264  ;;  %s22_s25 = sadd.s32 1, %s1198_s25   ;;  %s1603_s15 = sld [smem:[#allocation21_spill]] }
 0x1cd   : > { %p1509_p6 = scmp.ge.s32.totalorder %s22_s25, 8   ;;  %s1604_s3 = sld [smem:[#allocation19_spill]] }
 0x1ce   : > { %s1605_s24 = sld [smem:[#allocation12_spill]]  ;;  %s1610_s12 = smov %s1150_s13 }
 0x1cf   : > { %s1606_s20 = sld [smem:[#allocation20_spill]]  ;;  %s1611_s13 = smov %s1154_s14 }
 0x1d0   : > { %s1607_s22 = sld [smem:[#allocation15_spill]]  ;;  %s1616_s18 = smov %s1174_s19 }
 0x1d1   : > { %s1608_s26 = sld [smem:[#allocation16_spill]]  ;;  %s1618_s21 = smov %s1190_s23 }
 0x1d2   : > { %s1609_s1 = sld [smem:[#allocation17_spill]]  ;;  %s1612_s14 = smov %s1603_s15 }
 0x1d3   : > { %s1613_s15 = smov %s1162_s16  ;;  %s1614_s16 = smov %s1166_s17 }
 0x1d4   : > { %s1615_s17 = smov %s1604_s3  ;;  %s1617_s19 = smov %s1605_s24 }
 0x1d5   :  { %21 = sbr.rel (!%p1509_p6) target bundleno = 16 (0x10), region = 101 }
 0x1d7   : > { %s1619_s23 = smov %s1608_s26 }
 0x1d8   : > { %s1620_s24 = smov %s1609_s1 }
 0x1da   :  { %604 = vsyncpa [#allocation3], 1 }
 0x1db   :  { %606 = vsyncpa [#allocation3 + $0x1], 1 }
 0x1dc   :  { %607 = vsyncpa [#allocation6], 1 }
 0x1dd   :  { %609 = vsyncpa [#allocation6 + $0x1], 1 }
 0x1de   :  { %610 = vsyncpa [#allocation4], 1 }
 0x1df   :  { %612 = vsyncpa [#allocation4 + $0x1], 1 }

</bundles_post_ra>
